<compile_context>
chip_gen: v5e
topology: v5e:2x2
jax: 0.10.0
libtpu: 0.0.40
codegen_flags: <defaults>
</compile_context>

<pallas_src>
import functools
import math

import jax
import jax.numpy as jnp
from jax.experimental import pallas as pl
from jax.experimental.pallas import tpu as pltpu


def _round_up(x, m):
    return (x + m - 1) // m * m


# --------------------------------------------------------------------------------------
# Kernel: whole MLP fused.  refs = (x, w0, b0, w1, b1, ..., out)
# Weights are (K, N_pad) bf16 lane-major (BN-folded, transposed, zero-padded at setup);
# biases are (1, N_pad) f32.  Intermediate activations never touch HBM.
# --------------------------------------------------------------------------------------
def _fused_mlp_kernel(*refs, n_layers, apply_sigmoid):
    x_ref = refs[0]
    o_ref = refs[-1]
    wb = refs[1:-1]

    h = x_ref[...].astype(jnp.bfloat16)              # bf16 MXU feed
    acc = None
    for i in range(n_layers):                        # static unroll over layers
        w = wb[2 * i][...]                           # (K, N_pad) bf16
        b = wb[2 * i + 1][...]                       # (1, N_pad) f32, broadcasts over M
        acc = jnp.dot(h, w, preferred_element_type=jnp.float32) + b   # f32 accumulate
        if i < n_layers - 1:
            acc = jnp.maximum(acc, 0.0)              # ReLU; dropout is identity in eval
            h = acc.astype(jnp.bfloat16)
    out = acc
    if apply_sigmoid:
        out = jax.nn.sigmoid(out)                    # f32 on the EUP
    o_ref[...] = out.astype(o_ref.dtype)


# --------------------------------------------------------------------------------------
# One-time parameter prep (call at model setup — NOT in the per-call forward path).
# --------------------------------------------------------------------------------------
def init_fc_params(key, input_size, hidden_size):
    """Xavier-normal (gain=1.0) weights, zero biases — matches the module's init.
    Weights stored PyTorch-style (out, in); biases (out,)."""
    dims = [input_size] + list(hidden_size)
    params = []
    for i in range(len(hidden_size)):
        key, wk = jax.random.split(key)
        fan_in, fan_out = dims[i], dims[i + 1]
        std = math.sqrt(2.0 / (fan_in + fan_out))
        w = (std * jax.random.normal(wk, (fan_out, fan_in))).astype(jnp.float32)
        b = jnp.zeros((fan_out,), jnp.float32)
        params.append((w, b))
    return params


def prepare_fc_params(params, *, batch_norm=True, bn_buffers=None, eps=1e-5):
    """Fold eval-mode BatchNorm into each hidden Linear, transpose W to (in, out),
    zero-pad the output-feature axis to 128 lanes, cast W to bf16.

    bn_buffers[i] may supply (gamma, beta, running_mean, running_var) for hidden layer i
    (i.e. real trained buffers); None uses the freshly-initialized defaults (1,0,0,1).

    Returns (layers, dims): layers = [(w bf16 (K, N_pad), b f32 (1, N_pad)), ...] and
    dims = (d0, ..., dL) the true feature sizes (static metadata for the wrapper).
    """
    n_layers = len(params)
    dims = [params[0][0].shape[1]] + [w.shape[0] for (w, _) in params]

    layers = []
    prev_pad = dims[0]                    # first layer contracts the REAL input width
    for i, (w, b) in enumerate(params):
        out_dim, in_dim = w.shape
        if batch_norm and i < n_layers - 1:
            if bn_buffers is not None and bn_buffers[i] is not None:
                gamma, beta, mean, var = bn_buffers[i]
            else:
                gamma = jnp.ones((out_dim,), jnp.float32)
                beta = jnp.zeros((out_dim,), jnp.float32)
                mean = jnp.zeros((out_dim,), jnp.float32)
                var = jnp.ones((out_dim,), jnp.float32)
            s = gamma / jnp.sqrt(var + eps)          # eval BN is affine: y*s + t
            t = beta - mean * s
            w = w * s[:, None]
            b = b * s + t
        # N padded to 128 lanes -> lane-dense activations / unmasked output stores.
        # (A 256 pad would fill the v6e/v7x MXU fully, but the kernel is HBM/launch-bound
        #  at these sizes, so 128 keeps weight bytes minimal.)
        n_pad = _round_up(out_dim, 128)
        w_p = jnp.zeros((prev_pad, n_pad), jnp.float32).at[:in_dim, :out_dim].set(w.T)
        b_p = jnp.zeros((1, n_pad), jnp.float32).at[0, :out_dim].set(b)
        layers.append((w_p.astype(jnp.bfloat16), b_p))
        prev_pad = n_pad
    return layers, tuple(dims)


# --------------------------------------------------------------------------------------
# Wrapper: single fused pallas_call for the whole network.
# --------------------------------------------------------------------------------------
def _choose_bm(batch, block_m):
    """Batch-tile rows: one sublane-aligned tile for small batches; two tiles for
    block_m < B <= 2*block_m (so the 'parallel' axis feeds both v7x TCs); else block_m."""
    if batch <= block_m:
        return _round_up(batch, 8)
    if batch <= 2 * block_m:
        return _round_up(pl.cdiv(batch, 2), 8)
    return block_m


def fully_connected_forward(x, layers, dims, *, sigmoid=False, block_m=512,
                            tiny_batch_xla=False):
    """Eval-mode forward. `layers`/`dims` come from prepare_fc_params (one-time).

    tiny_batch_xla: for B <= 64 the whole net is ~1e5 FLOPs and kernel-launch overhead
    dominates; optionally let XLA fuse it instead of calling the Pallas kernel."""
    n_layers = len(layers)
    B, in_dim = x.shape
    assert in_dim == dims[0]
    out_dim = dims[-1]

    if tiny_batch_xla and B <= 64:
        h = x
        for i, (w, b) in enumerate(layers):
            h = jnp.dot(h.astype(jnp.bfloat16), w,
                        preferred_element_type=jnp.float32) + b
            if i < n_layers - 1:
                h = jnp.maximum(h, 0.0)
        if sigmoid:
            h = jax.nn.sigmoid(h)
        return h[:, :out_dim]

    out_pad = layers[-1][0].shape[1]
    bm = _choose_bm(B, block_m)
    grid = (pl.cdiv(B, bm),)

    # x streams untouched (real lane width, no host-side pad/copy); weights and biases
    # are grid-invariant and stay VMEM-resident across batch tiles.
    in_specs = [pl.BlockSpec((bm, in_dim), lambda i: (i, 0))]
    args = [x]
    for (w_p, b_p) in layers:
        k_p, n_p = w_p.shape
        in_specs.append(pl.BlockSpec((k_p, n_p), lambda i: (0, 0)))    # W: resident
        in_specs.append(pl.BlockSpec((1, n_p), lambda i: (0, 0)))      # b: resident
        args.extend([w_p, b_p])
    # NOTE: pipeline_mode=pl.Buffered(1) on the grid-invariant W/b specs would halve
    # their resident VMEM; negligible at these layer sizes, so intentionally omitted.

    # Cost hint (real, unpadded dims) so XLA can schedule around the custom call.
    flops = 2 * B * sum(dims[i] * dims[i + 1] for i in range(n_layers))
    weight_bytes = sum(w.size * 2 + b.size * 4 for (w, b) in layers)
    bytes_accessed = int(x.size * x.dtype.itemsize + B * out_pad * 4 + weight_bytes)
    cost = pl.CostEstimate(flops=int(flops),
                           transcendentals=int(B * out_dim) if sigmoid else 0,
                           bytes_accessed=bytes_accessed)

    # VMEM budget: double-buffered x/out tiles + (double-buffered) resident weights
    # + activation headroom.  Floor of 32 MiB lifts v5e's 16 MiB scoped default.
    max_npad = max(w.shape[1] for (w, _) in layers)
    vmem_needed = (2 * (bm * in_dim * 4 + bm * out_pad * 4)
                   + 2 * weight_bytes
                   + 4 * bm * max_npad * 4)
    vmem_limit = int(min(max(32 << 20, vmem_needed * 3 // 2), 48 << 20))
    # TODO(synk): if resident weights outgrow ~48 MiB (v7x has 64 MiB VMEM per core),
    # fall back to a K/N-tiled grid with an "arbitrary" reduction axis + f32 accumulator.

    kernel = functools.partial(_fused_mlp_kernel,
                               n_layers=n_layers, apply_sigmoid=sigmoid)

    out_padded = pl.pallas_call(
        kernel,
        out_shape=jax.ShapeDtypeStruct((B, out_pad), jnp.float32),
        grid=grid,
        in_specs=in_specs,
        out_specs=pl.BlockSpec((bm, out_pad), lambda i: (i, 0)),
        compiler_params=pltpu.CompilerParams(
            dimension_semantics=("parallel",),
            vmem_limit_bytes=vmem_limit),
        cost_estimate=cost,
    )(*args)

    return out_padded[:, :out_dim]


# --------------------------------------------------------------------------------------
# Pure-JAX reference of the exact eval-mode forward (f32 throughout), for verification.
# --------------------------------------------------------------------------------------
def _reference_forward(x, params, *, batch_norm=True, sigmoid=False, eps=1e-5,
                       bn_buffers=None):
    n_layers = len(params)
    h = x
    for i, (w, b) in enumerate(params):
        h = h @ w.T + b
        if i < n_layers - 1:
            if batch_norm:
                if bn_buffers is not None and bn_buffers[i] is not None:
                    gamma, beta, mean, var = bn_buffers[i]
                else:
                    gamma, beta, mean, var = 1.0, 0.0, 0.0, 1.0
                h = (h - mean) / jnp.sqrt(var + eps) * gamma + beta
            h = jnp.maximum(h, 0.0)
        elif sigmoid:
            h = jax.nn.sigmoid(h)
    return h


if __name__ == "__main__":
    # FullyConnectedLayer(input_size=32, hidden_size=[64, 32]) with defaults:
    # bias=True, batch_norm=True, dropout_rate=0.1 (identity in eval), activation='relu',
    # sigmoid=False.
    input_size = 32
    hidden_size = [64, 32]

    key = jax.random.PRNGKey(0)
    key, xk_small, xk_large = jax.random.split(key, 3)
    params = init_fc_params(key, input_size, hidden_size)

    # One-time prep (BN fold / transpose / pad / bf16) — hoisted out of the call path.
    layers, dims = prepare_fc_params(params, batch_norm=True)

    fwd = jax.jit(fully_connected_forward, static_argnums=(2,),
                  static_argnames=("sigmoid", "block_m", "tiny_batch_xla"))

    tol = dict(atol=2e-2, rtol=2e-2)   # bf16 MXU feed with f32 accumulation

    # Small batch: single 8-row tile.
    x_small = jax.random.normal(xk_small, (8, input_size), dtype=jnp.float32)
    out_small = jax.block_until_ready(fwd(x_small, layers, dims, sigmoid=False))
    ref_small = _reference_forward(x_small, params, batch_norm=True, sigmoid=False)
    assert out_small.shape == (8, hidden_size[-1])
    assert jnp.allclose(out_small, ref_small, **tol), "small-batch mismatch vs reference"

    # Sigmoid head variant.
    out_sig = jax.block_until_ready(fwd(x_small, layers, dims, sigmoid=True))
    ref_sig = _reference_forward(x_small, params, batch_norm=True, sigmoid=True)
    assert jnp.allclose(out_sig, ref_sig, **tol), "sigmoid-head mismatch vs reference"

    # Larger, non-divisible batch: exercises the 2-tile grid split (both v7x TCs) and the
    # masked partial final tile (x is never padded/copied host-side).
    x_large = jax.random.normal(xk_large, (1037, input_size), dtype=jnp.float32)
    out_large = jax.block_until_ready(fwd(x_large, layers, dims, sigmoid=False))
    ref_large = _reference_forward(x_large, params, batch_norm=True, sigmoid=False)
    assert out_large.shape == (1037, hidden_size[-1])
    assert jnp.allclose(out_large, ref_large, **tol), "large-batch mismatch vs reference"

    print("KERNEL_OK")
</pallas_src>

<mosaic_0001>
module attributes {stable_mosaic.version = 11 : i64} {
  func.func @_fused_mlp_kernel(%arg0: i32, %arg1: memref<8x32xf32, #tpu.memory_space<vmem>>, %arg2: memref<32x128xbf16, #tpu.memory_space<vmem>>, %arg3: memref<1x128xf32, #tpu.memory_space<vmem>>, %arg4: memref<128x128xbf16, #tpu.memory_space<vmem>>, %arg5: memref<1x128xf32, #tpu.memory_space<vmem>>, %arg6: memref<8x128xf32, #tpu.memory_space<vmem>>) attributes {dimension_semantics = [#tpu.dimension_semantics<parallel>], iteration_bounds = array<i64: 1>, scalar_prefetch = 0 : i64, scratch_operands = 0 : i64, tpu.core_type = #tpu.core_type<tc>, window_params = [{transform_indices = @transform_0, window_bounds = array<i64: 8, 32>}, {pipeline_mode = #tpu.pipeline_mode<synchronous>, transform_indices = @transform_1, window_bounds = array<i64: 32, 128>}, {pipeline_mode = #tpu.pipeline_mode<synchronous>, transform_indices = @transform_2, window_bounds = array<i64: 1, 128>}, {pipeline_mode = #tpu.pipeline_mode<synchronous>, transform_indices = @transform_3, window_bounds = array<i64: 128, 128>}, {pipeline_mode = #tpu.pipeline_mode<synchronous>, transform_indices = @transform_4, window_bounds = array<i64: 1, 128>}, {transform_indices = @transform_5, window_bounds = array<i64: 8, 128>}]} {
    %c0 = arith.constant 0 : index
    %c0_0 = arith.constant 0 : index
    %0 = vector.load %arg1[%c0, %c0_0] : memref<8x32xf32, #tpu.memory_space<vmem>>, vector<8x32xf32>
    %1 = arith.truncf %0 : vector<8x32xf32> to vector<8x32xbf16>
    %c0_1 = arith.constant 0 : index
    %c0_2 = arith.constant 0 : index
    %2 = vector.load %arg2[%c0_1, %c0_2] : memref<32x128xbf16, #tpu.memory_space<vmem>>, vector<32x128xbf16>
    %c0_3 = arith.constant 0 : index
    %c0_4 = arith.constant 0 : index
    %3 = vector.load %arg3[%c0_3, %c0_4] : memref<1x128xf32, #tpu.memory_space<vmem>>, vector<1x128xf32>
    %cst = arith.constant dense<0.000000e+00> : vector<8x128xf32>
    %4 = tpu.matmul %1, %2, %cst {dimension_numbers = #tpu.dot_dimension_numbers<[1], [0], [0], [1], [0, 0, 1, 1], [], []>} : vector<8x32xbf16>, vector<32x128xbf16>, vector<8x128xf32> -> vector<8x128xf32>
    %5 = vector.broadcast %3 : vector<1x128xf32> to vector<8x128xf32>
    %6 = arith.addf %4, %5 : vector<8x128xf32>
    %cst_5 = arith.constant 0.000000e+00 : f32
    %7 = vector.broadcast %cst_5 : f32 to vector<8x128xf32>
    %8 = arith.maximumf %6, %7 : vector<8x128xf32>
    %9 = arith.truncf %8 : vector<8x128xf32> to vector<8x128xbf16>
    %c0_6 = arith.constant 0 : index
    %c0_7 = arith.constant 0 : index
    %10 = vector.load %arg4[%c0_6, %c0_7] : memref<128x128xbf16, #tpu.memory_space<vmem>>, vector<128x128xbf16>
    %c0_8 = arith.constant 0 : index
    %c0_9 = arith.constant 0 : index
    %11 = vector.load %arg5[%c0_8, %c0_9] : memref<1x128xf32, #tpu.memory_space<vmem>>, vector<1x128xf32>
    %cst_10 = arith.constant dense<0.000000e+00> : vector<8x128xf32>
    %12 = tpu.matmul %9, %10, %cst_10 {dimension_numbers = #tpu.dot_dimension_numbers<[1], [0], [0], [1], [0, 0, 1, 1], [], []>} : vector<8x128xbf16>, vector<128x128xbf16>, vector<8x128xf32> -> vector<8x128xf32>
    %13 = vector.broadcast %11 : vector<1x128xf32> to vector<8x128xf32>
    %14 = arith.addf %12, %13 : vector<8x128xf32>
    %c0_11 = arith.constant 0 : index
    %c0_12 = arith.constant 0 : index
    %15 = vector.load %arg6[%c0_11, %c0_12] : memref<8x128xf32, #tpu.memory_space<vmem>>, vector<8x128xf32>
    tpu.vector_store %arg6[%c0_11, %c0_12], %14 {strides = array<i32>} : memref<8x128xf32, #tpu.memory_space<vmem>>, vector<8x128xf32>,
    return
  }
  func.func @transform_0(%arg0: i32) -> (i32, i32) {
    %c0_i32 = arith.constant 0 : i32
    %c0_i32_0 = arith.constant 0 : i32
    return %arg0, %c0_i32 : i32, i32
  }
  func.func @transform_1(%arg0: i32) -> (i32, i32) {
    %c0_i32 = arith.constant 0 : i32
    %c0_i32_0 = arith.constant 0 : i32
    %c0_i32_1 = arith.constant 0 : i32
    return %c0_i32, %c0_i32_0 : i32, i32
  }
  func.func @transform_2(%arg0: i32) -> (i32, i32) {
    %c0_i32 = arith.constant 0 : i32
    %c0_i32_0 = arith.constant 0 : i32
    %c0_i32_1 = arith.constant 0 : i32
    return %c0_i32, %c0_i32_0 : i32, i32
  }
  func.func @transform_3(%arg0: i32) -> (i32, i32) {
    %c0_i32 = arith.constant 0 : i32
    %c0_i32_0 = arith.constant 0 : i32
    %c0_i32_1 = arith.constant 0 : i32
    return %c0_i32, %c0_i32_0 : i32, i32
  }
  func.func @transform_4(%arg0: i32) -> (i32, i32) {
    %c0_i32 = arith.constant 0 : i32
    %c0_i32_0 = arith.constant 0 : i32
    %c0_i32_1 = arith.constant 0 : i32
    return %c0_i32, %c0_i32_0 : i32, i32
  }
  func.func @transform_5(%arg0: i32) -> (i32, i32) {
    %c0_i32 = arith.constant 0 : i32
    %c0_i32_0 = arith.constant 0 : i32
    return %arg0, %c0_i32 : i32, i32
  }
}

</mosaic_0001>

<bundles_post_ra>
// kernel: fully_connected_forward.1
= control target key start
LH: loop header
LB: loop body
LE: loop exit
PB: predicated region body
PF: predicated region fallthrough
CT: control target
= control target key end

     0   :  { %10 = vsyncpa [#allocation3], 0  ;;  %s423_s0 = inlined_call_operand.hbm [shape: f32[8,32], index: 0, kind: input, shape index: {}]   ;;  %s424_s1 = inlined_call_operand.hbm [shape: bf16[32,128], index: 1, kind: input, shape index: {}]   ;;  %s425_s2 = inlined_call_operand.vmem [shape: f32[1,128], index: 2, kind: input, shape index: {}]   ;;  %s426_s3 = inlined_call_operand.hbm [shape: bf16[128,128], index: 3, kind: input, shape index: {}]   ;;  %s427_s4 = inlined_call_operand.vmem [shape: f32[1,128], index: 4, kind: input, shape index: {}]   ;;  %s428_s5 = inlined_call_operand.hbm [shape: f32[8,128], index: 5, kind: output, shape index: {}]  }
   0x1   :  { %11 = vsyncpa [#allocation6], 0  ;;  %s28_s20 = sshll.u32 %s424_s1, 4  ;;  %s29_s20 = int_to_ptr.hbm [resolvable:$true] %s28_s20 }
   0x2   :  { %12 = vsyncpa [#allocation4], 0  ;;  %s369_s21 = smov [#allocation5]   ;;  %s18_s25 = sshll.u32 %s423_s0, 4  ;;  %s19_s25 = int_to_ptr.hbm [resolvable:$true] %s18_s25 }
   0x3   :  { %s30_s22 = sshll.u32 %s369_s21, 4  ;;  %s370_s26 = smov 64   ;;  %s31_s22 = int_to_ptr.vmem [resolvable:$true] %s30_s22 }
   0x4   :  { %s371_s27 = smov 4   ;;  %s372_s28 = smov [#allocation2]  }
   0x5   :  { %36 = dma.hbm_to_vmem [thread:$0]  %s29_s20, 256, %s31_s22, [#allocation6], %s370_s26, %s370_s26, %s371_s27  }
   0x6   :  { %s20_s29 = sshll.u32 %s372_s28, 4  ;;  %s43_s7 = sshll.u32 %s426_s3, 4  ;;  %s21_s29 = int_to_ptr.vmem [resolvable:$true] %s20_s29  ;;  %s44_s7 = int_to_ptr.hbm [resolvable:$true] %s43_s7 }
   0x7   :  { %23 = dma.hbm_to_vmem [thread:$0]  %s19_s25, 128, %s21_s29, [#allocation3]  }
   0x8   :  { %s373_s1 = smov [#allocation7]  }
   0x9   :  { %s45_s8 = sshll.u32 %s373_s1, 4  ;;  %s46_s8 = int_to_ptr.vmem [resolvable:$true] %s45_s8 }
   0xa   :  { %51 = dma.hbm_to_vmem [thread:$0]  %s44_s7, 1024, %s46_s8, [#allocation6], %s370_s26, %s370_s26, %s371_s27  }
   0xb   :  { %363 = dma.done.wait [#allocation3], 128  }
   0xc   :  { %364 = vsyncadd [#allocation3], 4294967168 }
   0xd   :  { %365 = dma.done.wait [#allocation6], 1280  }
   0xe   :  { %366 = vsyncadd [#allocation6], 4294966016  ;;  %v250_v0 = vld [vmem:[#allocation5 + $0x8] sm:$0xff]  ;;  %v249_v2 = vld [vmem:[#allocation5] sm:$0xff]  ;;  %vm89_vm0 = vcmask 261120   ;;  %s374_s11 = smov [#allocation8]  }
   0xf   :  { %v258_v1 = vld [vmem:[#allocation7 + $0x38] sm:$0xff]  ;;  %99 = vmatpush.bf16.msra.mxu0 %v250_v0  ;;  %v67_v3 = vld [vmem:[#allocation2] sm:$0xff]  ;;  %v257_v4 = vld [vmem:[#allocation7 + $0x30] sm:$0xff]  ;;  %s195_s12 = sshll.u32 %s374_s11, 4  ;;  %s197_s15 = sshll.u32 %s428_s5, 4  ;;  %s196_s12 = int_to_ptr.vmem [resolvable:$true] %s195_s12  ;;  %s198_s15 = int_to_ptr.hbm [resolvable:$true] %s197_s15 }
  0x10   :  { %176 = vmatpush.bf16.msra.mxu1 %v258_v1  ;;  %v68_v5 = vpack.c.bf16 %v67_v3, %v67_v3  ;;  %v256_v6 = vld [vmem:[#allocation7 + $0x28] sm:$0xff]  ;;  %v255_v7 = vld [vmem:[#allocation7 + $0x20] sm:$0xff]  ;;  %v254_v8 = vld [vmem:[#allocation7 + $0x18] sm:$0xff] }
  0x11   :  { %v253_v9 = vld [vmem:[#allocation7 + $0x10] sm:$0xff]  ;;  %v252_v10 = vld [vmem:[#allocation7 + $0x8] sm:$0xff]  ;;  %v251_v11 = vld [vmem:[#allocation7] sm:$0xff] }
  0x12   :  { %v265_v12 = vld [vmem:[%s425_s2] ss:$0 sm:$0xff] }
  0x13   :  { %100 = vmatpush.bf16.msra.mxu0 %v249_v2  ;;  %v266_v18 = vld [vmem:[%s427_s4] ss:$0 sm:$0xff] }
  0x14   :  { %177 = vmatpush.bf16.msra.mxu1 %v257_v4 }
  0x16   :  { %216 = vmatmul.msk.bf16.vlgmr.msra.gmra.mxu0 %vm89_vm0, %v68_v5 }
  0x18   :  { %178 = vmatpush.bf16.msra.mxu1 %v256_v6 }
  0x1c   :  { %179 = vmatpush.bf16.msra.mxu1 %v255_v7 }
  0x20   :  { %180 = vmatpush.bf16.msra.mxu1 %v254_v8 }
  0x24   :  { %181 = vmatpush.bf16.msra.mxu1 %v253_v9 }
  0x28   :  { %182 = vmatpush.bf16.msra.mxu1 %v252_v10 }
  0x2c   :  { %183 = vmatpush.bf16.msra.mxu1 %v251_v11 }
  0x93   :  { %v102_v13 = vpop.f32.mrf.mxu0 }
  0x94   :  { %v103_v14 = vadd.f32 %v265_v12, %v102_v13 }
  0x96   :  { %v106_v15 = vmax.f32 %v103_v14, 0.0 }
  0x98   :  { %v107_v16 = vpack.c.bf16 %v106_v15, %v106_v15 }
  0x9a   :  { %184 = vmatmul.bf16.vlgmr.msra.gmra.mxu1 %v107_v16 }
  0x9b   :  { %v104_v17 = vpop.f32.mrf.mxu0 }
 0x117   :  { %v185_v19 = vpop.f32.mrf.mxu1 }
 0x118   :  { %v186_v20 = vadd.f32 %v266_v18, %v185_v19 }
 0x11a   :  { %189 = vst [vmem:[#allocation8] sm:$0xff] %v186_v20 }
 0x11b   :  { %200 = dma.vmem_to_hbm [thread:$0]  %s196_s12, 128, %s198_s15, [#allocation4]  }
 0x11f   :  { %v187_v21 = vpop.f32.mrf.mxu1 }
 0x120   :  { %367 = dma.done.wait [#allocation4], 128  }
 0x121   :  { %368 = vsyncadd [#allocation4], 4294967168 }
 0x122   :  { %205 = vsyncpa [#allocation3], 1 }
 0x123   :  { %206 = vsyncpa [#allocation6], 1 }
 0x124   :  { %207 = vsyncpa [#allocation4], 1 }

</bundles_post_ra>
